<compile_context>
chip_gen: v7x
topology: tpu7x:2x2x1
jax: 0.10.0
libtpu: 0.0.40
codegen_flags: <defaults>
</compile_context>

<pallas_src>
import math

import jax
import jax.numpy as jnp
from jax.experimental import pallas as pl
from jax.experimental.pallas import tpu as pltpu


def cmix_kernel(x_ref, prev_ref, maa_k_ref, maa_r_ref,
                wk_ref, wv_ref, wr_ref, o_ref,
                acc_ref, gate_ref, xk_ref):
    # x_ref    : (TM, C)  bf16 activation row tile (flattened B*T rows)
    # prev_ref : (1, 1, C) bf16 row preceding this tile (zero at seq start)
    # maa_*    : (1, C)   f32 time-mix coefficients
    # wk_ref   : (C, TF) bf16   wv_ref : (TF, C) bf16   wr_ref : (C, C) bf16
    # o_ref    : (TM, C)  output tile
    # acc_ref  : (TM, C) f32   scratch (kv accumulator over F tiles)
    # gate_ref : (TM, C) bf16  scratch (sigmoid(receptance), computed once)
    # xk_ref   : (TM, C) bf16  scratch (mixed key input, computed once)
    f = pl.program_id(1)
    nf = pl.num_programs(1)

    @pl.when(f == 0)
    def _prologue():
        # Hoisted out of the F loop: token shift, mixes, receptance gate.
        x = x_ref[...].astype(jnp.float32)                  # (TM, C)
        prev = prev_ref[0].astype(jnp.float32)              # (1, C) halo row
        # token shift within the tile: xs[t] = x[t-1], xs[0] = halo row
        xs = jnp.concatenate([prev, x[:-1, :]], axis=0)     # (TM, C)
        xx = xs - x

        maa_k = maa_k_ref[...].astype(jnp.float32)          # (1, C) broadcast
        maa_r = maa_r_ref[...].astype(jnp.float32)
        xk_ref[...] = (x + xx * maa_k).astype(xk_ref.dtype)

        xr = x + xx * maa_r
        r = jnp.dot(xr.astype(wr_ref.dtype), wr_ref[...],
                    preferred_element_type=jnp.float32)
        gate_ref[...] = jax.nn.sigmoid(r).astype(gate_ref.dtype)
        acc_ref[...] = jnp.zeros_like(acc_ref)

    # key -> relu^2 -> value, accumulated over the F (dim_ffn) tiles.
    k = jnp.dot(xk_ref[...], wk_ref[...],
                preferred_element_type=jnp.float32)          # (TM, TF) f32
    k = jnp.maximum(k, 0.0)
    k = k * k
    acc_ref[...] += jnp.dot(k.astype(wv_ref.dtype), wv_ref[...],
                            preferred_element_type=jnp.float32)

    @pl.when(f == nf - 1)
    def _epilogue():
        o_ref[...] = (gate_ref[...].astype(jnp.float32)
                      * acc_ref[...]).astype(o_ref.dtype)


def _tpu_defaults():
    """Per-generation (vmem_capacity_bytes, tm_target, tf_target)."""
    vmem = None
    try:
        vmem = int(pltpu.get_tpu_info().vmem_capacity_bytes)
    except Exception:
        vmem = None
    kind = ""
    try:
        kind = jax.devices()[0].device_kind.lower()
    except Exception:
        pass
    if vmem is None:
        vmem = (64 << 20) if "v7" in kind else (128 << 20)
    if "v5" in kind:
        # 197 TF/s vs 0.82 TB/s -> break-even TM ~ 240; keep VMEM modest.
        return vmem, 512, 1024
    if "v7" in kind or vmem <= (64 << 20):
        # 64 MiB / TensorCore: smaller FFN tiles, moderate row tiles.
        return vmem, 512, 512
    # v6e (default): big row tiles so weight DMA hides under the MXU.
    return vmem, 1024, 1024


def _tile_candidates(n, multiple, target):
    """Divisors of n that are multiples of `multiple`, capped at `target`,
    sorted descending.  Falls back to [n] (full extent) if none exist."""
    divs = [d for d in range(multiple, n + 1, multiple) if n % d == 0]
    if not divs:
        return [n]
    capped = [d for d in divs if d <= target]
    if not capped:
        capped = [min(divs)]
    return sorted(capped, reverse=True)


def rwkv_cmix_x060(x, time_maa_k, time_maa_r, w_key, w_value, w_receptance,
                   *, tm_target=None, tf_target=None,
                   compute_dtype=jnp.bfloat16, out_dtype=None):
    """x: (B, T, C).  Weights stored transposed (in_features, out_features)."""
    B, T, C = x.shape
    Cw, F = w_key.shape
    assert Cw == C and w_value.shape == (F, C) and w_receptance.shape == (C, C)
    out_dtype = x.dtype if out_dtype is None else out_dtype

    M = B * T

    # --- generation-aware tile targets & VMEM budget ------------------------
    vmem_cap, tm_def, tf_def = _tpu_defaults()
    tm_target = tm_def if tm_target is None else tm_target
    tf_target = tf_def if tf_target is None else tf_target

    w_isz = jnp.dtype(compute_dtype).itemsize
    x_isz = w_isz                               # activations streamed in bf16
    out_isz = jnp.dtype(out_dtype).itemsize

    def vmem_est(tm, tf, inv_bufs):
        return (2 * tm * C * x_isz              # x tile (double-buffered)
                + 2 * C * x_isz                 # halo row
                + inv_bufs * 2 * C * 4          # maa_k / maa_r (f32)
                + 2 * C * tf * w_isz            # W_key tile
                + 2 * tf * C * w_isz            # W_value tile
                + inv_bufs * C * C * w_isz      # W_receptance
                + 2 * tm * C * out_isz          # output tile
                + tm * C * 4                    # acc scratch (f32)
                + 2 * tm * C * w_isz)           # gate + xk scratch (bf16)

    # TM must divide T so a row tile never crosses a sequence boundary;
    # prefer the largest TM that fits (weight re-streaming ~ 1/TM), then TF.
    tm_cands = _tile_candidates(T, 8, tm_target)
    tf_cands = _tile_candidates(F, 128, tf_target)
    budget = int(0.85 * vmem_cap)
    TM = TF = None
    for tm in tm_cands:
        for tf in tf_cands:
            if vmem_est(tm, tf, 1) <= budget:
                TM, TF = tm, tf
                break
        if TM is not None:
            break
    if TM is None:
        TM, TF = tm_cands[-1], tf_cands[-1]

    # TODO(synk): pad/mask rows when T is not a multiple of 8 and B > 1;
    # currently that configuration is rejected.
    assert TM % 8 == 0 or TM == M, (
        "T must be a multiple of 8 (TPU sublane tiling) when B > 1")
    nt_m = M // TM
    nt_f = F // TF

    # --- wrapper-side prep (no full-tensor duplication) ----------------------
    xf = x.reshape(M, C).astype(compute_dtype)

    # halo row per tile: last row of the previous tile, zero at sequence start
    if nt_m > 1:
        prev_rows = xf[TM - 1:M - 1:TM]                           # (nt_m-1, C)
        prev = jnp.concatenate(
            [jnp.zeros((1, C), xf.dtype), prev_rows], axis=0)     # (nt_m, C)
    else:
        prev = jnp.zeros((1, C), xf.dtype)
    tiles_per_seq = T // TM
    seq_start = (jnp.arange(nt_m) % tiles_per_seq) == 0
    prev = jnp.where(seq_start[:, None], jnp.zeros_like(prev), prev)
    prev = prev.reshape(nt_m, 1, C)

    maa_k = time_maa_k.reshape(1, C).astype(jnp.float32)
    maa_r = time_maa_r.reshape(1, C).astype(jnp.float32)

    wk = w_key.astype(compute_dtype)
    wv = w_value.astype(compute_dtype)
    wr = w_receptance.astype(compute_dtype)

    # VMEM limit: never above ~90% of this generation's physical VMEM.
    vmem_limit = int(min(max(vmem_est(TM, TF, 2) + (4 << 20), 16 << 20),
                         int(0.90 * vmem_cap)))

    # CostEstimate reflecting the real DMA pattern: W_key/W_value are
    # re-fetched once per row tile under the (i, f) grid; W_receptance once.
    flops = 2 * M * C * (2 * F + C)
    bytes_accessed = (M * C * (x_isz + out_isz)            # x in, out
                      + nt_m * C * x_isz + 2 * C * 4       # halo rows + maa
                      + nt_m * 2 * C * F * w_isz           # wk + wv per row tile
                      + C * C * w_isz)                     # w_receptance once
    cost = pl.CostEstimate(flops=int(flops), transcendentals=int(M * C),
                           bytes_accessed=int(bytes_accessed))

    def build(single_buffer_invariant):
        inv_kwargs = (dict(pipeline_mode=pl.Buffered(1))
                      if single_buffer_invariant else {})
        grid_spec = pltpu.PrefetchScalarGridSpec(
            num_scalar_prefetch=0,
            grid=(nt_m, nt_f),
            in_specs=[
                pl.BlockSpec((TM, C), lambda i, f: (i, 0)),        # x rows
                pl.BlockSpec((1, 1, C), lambda i, f: (i, 0, 0)),   # halo row
                pl.BlockSpec((1, C), lambda i, f: (0, 0),          # time_maa_k
                             **inv_kwargs),
                pl.BlockSpec((1, C), lambda i, f: (0, 0),          # time_maa_r
                             **inv_kwargs),
                pl.BlockSpec((C, TF), lambda i, f: (0, f)),        # W_key
                pl.BlockSpec((TF, C), lambda i, f: (f, 0)),        # W_value
                pl.BlockSpec((C, C), lambda i, f: (0, 0),          # W_recept.
                             **inv_kwargs),
            ],
            out_specs=pl.BlockSpec((TM, C), lambda i, f: (i, 0)),
            scratch_shapes=[pltpu.VMEM((TM, C), jnp.float32),      # kv acc
                            pltpu.VMEM((TM, C), compute_dtype),    # gate
                            pltpu.VMEM((TM, C), compute_dtype)],   # xk
        )
        return pl.pallas_call(
            cmix_kernel,
            out_shape=jax.ShapeDtypeStruct((M, C), out_dtype),
            grid_spec=grid_spec,
            compiler_params=pltpu.CompilerParams(
                dimension_semantics=("parallel", "arbitrary"),
                vmem_limit_bytes=vmem_limit),
            cost_estimate=cost,
        )

    try:
        out_flat = build(True)(xf, prev, maa_k, maa_r, wk, wv, wr)
    except Exception:
        # pl.Buffered(1) on grid-invariant inputs is purely a VMEM saving;
        # fall back to default double-buffering if this JAX rejects it.
        out_flat = build(False)(xf, prev, maa_k, maa_r, wk, wv, wr)

    return out_flat.reshape(B, T, C)


def reference(x, time_maa_k, time_maa_r, w_key, w_value, w_receptance):
    B, T, C = x.shape
    xs = jnp.concatenate(
        [jnp.zeros((B, 1, C), dtype=x.dtype), x[:, :-1, :]], axis=1)
    xx = xs - x
    xk = x + xx * time_maa_k
    xr = x + xx * time_maa_r
    k = jnp.einsum('btc,cf->btf', xk, w_key)
    k = jnp.maximum(k, 0.0) ** 2
    kv = jnp.einsum('btf,fc->btc', k, w_value)
    r = jax.nn.sigmoid(jnp.einsum('btc,cd->btd', xr, w_receptance))
    return r * kv


if __name__ == "__main__":
    # Small synthetic config consistent with the module:
    B, T = 2, 8
    n_embd, dim_ffn = 32, 64
    n_layer, layer_id = 4, 1

    # Deterministic parameter init (mirrors __init__ math for time_maa_*):
    ratio_1_to_almost0 = 1.0 - layer_id / n_layer
    ddd = (jnp.arange(n_embd, dtype=jnp.float32) / n_embd).reshape(1, 1, n_embd)
    time_maa_k = 1.0 - jnp.power(ddd, ratio_1_to_almost0)
    time_maa_r = 1.0 - jnp.power(ddd, ratio_1_to_almost0)

    key = jax.random.PRNGKey(0)
    kx, kk, kv_, kr = jax.random.split(key, 4)
    x = jax.random.normal(kx, (B, T, n_embd), dtype=jnp.float32)
    # nn.Linear weights (bias=False); stored transposed as (in, out) for y = x @ W
    w_key = jax.random.normal(kk, (n_embd, dim_ffn), dtype=jnp.float32) * 0.02
    w_value = jax.random.normal(kv_, (dim_ffn, n_embd), dtype=jnp.float32) * 0.02
    w_receptance = jax.random.normal(kr, (n_embd, n_embd), dtype=jnp.float32) * 0.02

    out = rwkv_cmix_x060(x, time_maa_k, time_maa_r, w_key, w_value, w_receptance)
    out = jax.block_until_ready(out)

    ref = reference(x, time_maa_k, time_maa_r, w_key, w_value, w_receptance)
    assert out.shape == (B, T, n_embd)
    # Tolerance accounts for bf16 matmul inputs / bf16-streamed activations
    # (f32 accumulation and f32 elementwise math in-kernel).
    assert jnp.allclose(out, ref, atol=2e-3, rtol=2e-2), "mismatch vs reference"

    print("KERNEL_OK")
</pallas_src>

<mosaic_0001>
module attributes {stable_mosaic.version = 11 : i64} {
  func.func @cmix_kernel(%arg0: i32, %arg1: i32, %arg2: memref<8x32xbf16, #tpu.memory_space<vmem>>, %arg3: memref<1x1x32xbf16, #tpu.memory_space<vmem>>, %arg4: memref<1x32xf32, #tpu.memory_space<vmem>>, %arg5: memref<1x32xf32, #tpu.memory_space<vmem>>, %arg6: memref<32x64xbf16, #tpu.memory_space<vmem>>, %arg7: memref<64x32xbf16, #tpu.memory_space<vmem>>, %arg8: memref<32x32xbf16, #tpu.memory_space<vmem>>, %arg9: memref<8x32xf32, #tpu.memory_space<vmem>>, %arg10: memref<8x32xf32, #tpu.memory_space<vmem>>, %arg11: memref<8x32xbf16, #tpu.memory_space<vmem>>, %arg12: memref<8x32xbf16, #tpu.memory_space<vmem>>) attributes {dimension_semantics = [#tpu.dimension_semantics<parallel>, #tpu.dimension_semantics<arbitrary>], iteration_bounds = array<i64: 2, 1>, scalar_prefetch = 0 : i64, scratch_operands = 3 : i64, tpu.core_type = #tpu.core_type<tc>, window_params = [{transform_indices = @transform_0, window_bounds = array<i64: 8, 32>}, {transform_indices = @transform_1, window_bounds = array<i64: 1, 1, 32>}, {pipeline_mode = #tpu.pipeline_mode<synchronous>, transform_indices = @transform_2, window_bounds = array<i64: 1, 32>}, {pipeline_mode = #tpu.pipeline_mode<synchronous>, transform_indices = @transform_3, window_bounds = array<i64: 1, 32>}, {transform_indices = @transform_4, window_bounds = array<i64: 32, 64>}, {transform_indices = @transform_5, window_bounds = array<i64: 64, 32>}, {pipeline_mode = #tpu.pipeline_mode<synchronous>, transform_indices = @transform_6, window_bounds = array<i64: 32, 32>}, {transform_indices = @transform_7, window_bounds = array<i64: 8, 32>}]} {
    %c0_i32 = arith.constant 0 : i32
    %0 = arith.cmpi eq, %arg1, %c0_i32 : i32
    %1 = arith.extui %0 : i1 to i32
    %c0_i32_0 = arith.constant 0 : i32
    %2 = arith.cmpi ne, %1, %c0_i32_0 : i32
    scf.if %2 {
      %c0_14 = arith.constant 0 : index
      %c0_15 = arith.constant 0 : index
      %18 = vector.load %arg2[%c0_14, %c0_15] : memref<8x32xbf16, #tpu.memory_space<vmem>>, vector<8x32xbf16>
      %19 = arith.extf %18 : vector<8x32xbf16> to vector<8x32xf32>
      %c0_16 = arith.constant 0 : index
      %c0_17 = arith.constant 0 : index
      %c0_18 = arith.constant 0 : index
      %20 = vector.load %arg3[%c0_16, %c0_17, %c0_18] : memref<1x1x32xbf16, #tpu.memory_space<vmem>>, vector<1x1x32xbf16>
      %21 = vector.shape_cast %20 : vector<1x1x32xbf16> to vector<1x32xbf16>
      %22 = arith.extf %21 : vector<1x32xbf16> to vector<1x32xf32>
      %23 = vector.extract_strided_slice %19 {offsets = [0, 0], sizes = [7, 32], strides = [1, 1]} : vector<8x32xf32> to vector<7x32xf32>
      %24 = tpu.concatenate %22, %23 in 0 : vector<1x32xf32>, vector<7x32xf32> -> vector<8x32xf32>
      %25 = arith.subf %24, %19 : vector<8x32xf32>
      %c0_19 = arith.constant 0 : index
      %c0_20 = arith.constant 0 : index
      %26 = vector.load %arg4[%c0_19, %c0_20] : memref<1x32xf32, #tpu.memory_space<vmem>>, vector<1x32xf32>
      %c0_21 = arith.constant 0 : index
      %c0_22 = arith.constant 0 : index
      %27 = vector.load %arg5[%c0_21, %c0_22] : memref<1x32xf32, #tpu.memory_space<vmem>>, vector<1x32xf32>
      %28 = vector.broadcast %26 : vector<1x32xf32> to vector<8x32xf32>
      %29 = arith.mulf %25, %28 : vector<8x32xf32>
      %30 = arith.addf %19, %29 : vector<8x32xf32>
      %31 = arith.truncf %30 : vector<8x32xf32> to vector<8x32xbf16>
      %c0_23 = arith.constant 0 : index
      %c0_24 = arith.constant 0 : index
      %32 = vector.load %arg12[%c0_23, %c0_24] : memref<8x32xbf16, #tpu.memory_space<vmem>>, vector<8x32xbf16>
      tpu.vector_store %arg12[%c0_23, %c0_24], %31 {strides = array<i32>} : memref<8x32xbf16, #tpu.memory_space<vmem>>, vector<8x32xbf16>,
      %33 = vector.broadcast %27 : vector<1x32xf32> to vector<8x32xf32>
      %34 = arith.mulf %25, %33 : vector<8x32xf32>
      %35 = arith.addf %19, %34 : vector<8x32xf32>
      %36 = arith.truncf %35 : vector<8x32xf32> to vector<8x32xbf16>
      %c0_25 = arith.constant 0 : index
      %c0_26 = arith.constant 0 : index
      %37 = vector.load %arg8[%c0_25, %c0_26] : memref<32x32xbf16, #tpu.memory_space<vmem>>, vector<32x32xbf16>
      %cst_27 = arith.constant dense<0.000000e+00> : vector<8x32xf32>
      %38 = tpu.matmul %36, %37, %cst_27 {dimension_numbers = #tpu.dot_dimension_numbers<[1], [0], [0], [1], [0, 0, 1, 1], [], []>} : vector<8x32xbf16>, vector<32x32xbf16>, vector<8x32xf32> -> vector<8x32xf32>
      %39 = arith.negf %38 : vector<8x32xf32>
      %40 = math.exp %39 : vector<8x32xf32>
      %cst_28 = arith.constant 1.000000e+00 : f32
      %41 = vector.broadcast %cst_28 : f32 to vector<8x32xf32>
      %42 = arith.addf %41, %40 : vector<8x32xf32>
      %43 = arith.divf %41, %42 : vector<8x32xf32>
      %44 = arith.truncf %43 : vector<8x32xf32> to vector<8x32xbf16>
      %c0_29 = arith.constant 0 : index
      %c0_30 = arith.constant 0 : index
      %45 = vector.load %arg11[%c0_29, %c0_30] : memref<8x32xbf16, #tpu.memory_space<vmem>>, vector<8x32xbf16>
      tpu.vector_store %arg11[%c0_29, %c0_30], %44 {strides = array<i32>} : memref<8x32xbf16, #tpu.memory_space<vmem>>, vector<8x32xbf16>,
      %cst_31 = arith.constant 0.000000e+00 : f32
      %46 = vector.broadcast %cst_31 : f32 to vector<8x32xf32>
      %c0_32 = arith.constant 0 : index
      %c0_33 = arith.constant 0 : index
      %47 = vector.load %arg10[%c0_32, %c0_33] : memref<8x32xf32, #tpu.memory_space<vmem>>, vector<8x32xf32>
      tpu.vector_store %arg10[%c0_32, %c0_33], %46 {strides = array<i32>} : memref<8x32xf32, #tpu.memory_space<vmem>>, vector<8x32xf32>,
    } else {
    }
    %c0 = arith.constant 0 : index
    %c0_1 = arith.constant 0 : index
    %3 = vector.load %arg12[%c0, %c0_1] : memref<8x32xbf16, #tpu.memory_space<vmem>>, vector<8x32xbf16>
    %c0_2 = arith.constant 0 : index
    %c0_3 = arith.constant 0 : index
    %4 = vector.load %arg6[%c0_2, %c0_3] : memref<32x64xbf16, #tpu.memory_space<vmem>>, vector<32x64xbf16>
    %cst = arith.constant dense<0.000000e+00> : vector<8x64xf32>
    %5 = tpu.matmul %3, %4, %cst {dimension_numbers = #tpu.dot_dimension_numbers<[1], [0], [0], [1], [0, 0, 1, 1], [], []>} : vector<8x32xbf16>, vector<32x64xbf16>, vector<8x64xf32> -> vector<8x64xf32>
    %cst_4 = arith.constant 0.000000e+00 : f32
    %6 = vector.broadcast %cst_4 : f32 to vector<8x64xf32>
    %7 = arith.maximumf %5, %6 : vector<8x64xf32>
    %8 = arith.mulf %7, %7 : vector<8x64xf32>
    %c0_5 = arith.constant 0 : index
    %c0_6 = arith.constant 0 : index
    %9 = vector.load %arg10[%c0_5, %c0_6] : memref<8x32xf32, #tpu.memory_space<vmem>>, vector<8x32xf32>
    %10 = arith.truncf %8 : vector<8x64xf32> to vector<8x64xbf16>
    %c0_7 = arith.constant 0 : index
    %c0_8 = arith.constant 0 : index
    %11 = vector.load %arg7[%c0_7, %c0_8] : memref<64x32xbf16, #tpu.memory_space<vmem>>, vector<64x32xbf16>
    %cst_9 = arith.constant dense<0.000000e+00> : vector<8x32xf32>
    %12 = tpu.matmul %10, %11, %cst_9 {dimension_numbers = #tpu.dot_dimension_numbers<[1], [0], [0], [1], [0, 0, 1, 1], [], []>} : vector<8x64xbf16>, vector<64x32xbf16>, vector<8x32xf32> -> vector<8x32xf32>
    %13 = arith.addf %9, %12 : vector<8x32xf32>
    %c0_10 = arith.constant 0 : index
    %c0_11 = arith.constant 0 : index
    %14 = vector.load %arg10[%c0_10, %c0_11] : memref<8x32xf32, #tpu.memory_space<vmem>>, vector<8x32xf32>
    tpu.vector_store %arg10[%c0_10, %c0_11], %13 {strides = array<i32>} : memref<8x32xf32, #tpu.memory_space<vmem>>, vector<8x32xf32>,
    %c0_i32_12 = arith.constant 0 : i32
    %15 = arith.cmpi eq, %arg1, %c0_i32_12 : i32
    %16 = arith.extui %15 : i1 to i32
    %c0_i32_13 = arith.constant 0 : i32
    %17 = arith.cmpi ne, %16, %c0_i32_13 : i32
    scf.if %17 {
      %c0_14 = arith.constant 0 : index
      %c0_15 = arith.constant 0 : index
      %18 = vector.load %arg11[%c0_14, %c0_15] : memref<8x32xbf16, #tpu.memory_space<vmem>>, vector<8x32xbf16>
      %19 = arith.extf %18 : vector<8x32xbf16> to vector<8x32xf32>
      %c0_16 = arith.constant 0 : index
      %c0_17 = arith.constant 0 : index
      %20 = vector.load %arg10[%c0_16, %c0_17] : memref<8x32xf32, #tpu.memory_space<vmem>>, vector<8x32xf32>
      %21 = arith.mulf %19, %20 : vector<8x32xf32>
      %c0_18 = arith.constant 0 : index
      %c0_19 = arith.constant 0 : index
      %22 = vector.load %arg9[%c0_18, %c0_19] : memref<8x32xf32, #tpu.memory_space<vmem>>, vector<8x32xf32>
      tpu.vector_store %arg9[%c0_18, %c0_19], %21 {strides = array<i32>} : memref<8x32xf32, #tpu.memory_space<vmem>>, vector<8x32xf32>,
    } else {
    }
    return
  }
  func.func @transform_0(%arg0: i32, %arg1: i32) -> (i32, i32) {
    %c0_i32 = arith.constant 0 : i32
    %c0_i32_0 = arith.constant 0 : i32
    return %arg0, %c0_i32 : i32, i32
  }
  func.func @transform_1(%arg0: i32, %arg1: i32) -> (i32, i32, i32) {
    %c0_i32 = arith.constant 0 : i32
    %c0_i32_0 = arith.constant 0 : i32
    %c0_i32_1 = arith.constant 0 : i32
    return %arg0, %c0_i32, %c0_i32_0 : i32, i32, i32
  }
  func.func @transform_2(%arg0: i32, %arg1: i32) -> (i32, i32) {
    %c0_i32 = arith.constant 0 : i32
    %c0_i32_0 = arith.constant 0 : i32
    %c0_i32_1 = arith.constant 0 : i32
    return %c0_i32, %c0_i32_0 : i32, i32
  }
  func.func @transform_3(%arg0: i32, %arg1: i32) -> (i32, i32) {
    %c0_i32 = arith.constant 0 : i32
    %c0_i32_0 = arith.constant 0 : i32
    %c0_i32_1 = arith.constant 0 : i32
    return %c0_i32, %c0_i32_0 : i32, i32
  }
  func.func @transform_4(%arg0: i32, %arg1: i32) -> (i32, i32) {
    %c0_i32 = arith.constant 0 : i32
    %c0_i32_0 = arith.constant 0 : i32
    return %c0_i32, %arg1 : i32, i32
  }
  func.func @transform_5(%arg0: i32, %arg1: i32) -> (i32, i32) {
    %c0_i32 = arith.constant 0 : i32
    %c0_i32_0 = arith.constant 0 : i32
    return %arg1, %c0_i32 : i32, i32
  }
  func.func @transform_6(%arg0: i32, %arg1: i32) -> (i32, i32) {
    %c0_i32 = arith.constant 0 : i32
    %c0_i32_0 = arith.constant 0 : i32
    %c0_i32_1 = arith.constant 0 : i32
    return %c0_i32, %c0_i32_0 : i32, i32
  }
  func.func @transform_7(%arg0: i32, %arg1: i32) -> (i32, i32) {
    %c0_i32 = arith.constant 0 : i32
    %c0_i32_0 = arith.constant 0 : i32
    return %arg0, %c0_i32 : i32, i32
  }
}

module attributes {stable_mosaic.version = 11 : i64} {
  func.func @cmix_kernel(%arg0: i32, %arg1: i32, %arg2: memref<8x32xbf16, #tpu.memory_space<vmem>>, %arg3: memref<1x1x32xbf16, #tpu.memory_space<vmem>>, %arg4: memref<1x32xf32, #tpu.memory_space<vmem>>, %arg5: memref<1x32xf32, #tpu.memory_space<vmem>>, %arg6: memref<32x64xbf16, #tpu.memory_space<vmem>>, %arg7: memref<64x32xbf16, #tpu.memory_space<vmem>>, %arg8: memref<32x32xbf16, #tpu.memory_space<vmem>>, %arg9: memref<8x32xf32, #tpu.memory_space<vmem>>, %arg10: memref<8x32xf32, #tpu.memory_space<vmem>>, %arg11: memref<8x32xbf16, #tpu.memory_space<vmem>>, %arg12: memref<8x32xbf16, #tpu.memory_space<vmem>>) attributes {dimension_semantics = [#tpu.dimension_semantics<parallel>, #tpu.dimension_semantics<arbitrary>], iteration_bounds = array<i64: 2, 1>, scalar_prefetch = 0 : i64, scratch_operands = 3 : i64, tpu.core_type = #tpu.core_type<tc>, window_params = [{transform_indices = @transform_0, window_bounds = array<i64: 8, 32>}, {transform_indices = @transform_1, window_bounds = array<i64: 1, 1, 32>}, {pipeline_mode = #tpu.pipeline_mode<synchronous>, transform_indices = @transform_2, window_bounds = array<i64: 1, 32>}, {pipeline_mode = #tpu.pipeline_mode<synchronous>, transform_indices = @transform_3, window_bounds = array<i64: 1, 32>}, {transform_indices = @transform_4, window_bounds = array<i64: 32, 64>}, {transform_indices = @transform_5, window_bounds = array<i64: 64, 32>}, {pipeline_mode = #tpu.pipeline_mode<synchronous>, transform_indices = @transform_6, window_bounds = array<i64: 32, 32>}, {transform_indices = @transform_7, window_bounds = array<i64: 8, 32>}]} {
    %c0_i32 = arith.constant 0 : i32
    %0 = arith.cmpi eq, %arg1, %c0_i32 : i32
    %1 = arith.extui %0 : i1 to i32
    %c0_i32_0 = arith.constant 0 : i32
    %2 = arith.cmpi ne, %1, %c0_i32_0 : i32
    scf.if %2 {
      %c0_14 = arith.constant 0 : index
      %c0_15 = arith.constant 0 : index
      %18 = vector.load %arg2[%c0_14, %c0_15] : memref<8x32xbf16, #tpu.memory_space<vmem>>, vector<8x32xbf16>
      %19 = arith.extf %18 : vector<8x32xbf16> to vector<8x32xf32>
      %c0_16 = arith.constant 0 : index
      %c0_17 = arith.constant 0 : index
      %c0_18 = arith.constant 0 : index
      %20 = vector.load %arg3[%c0_16, %c0_17, %c0_18] : memref<1x1x32xbf16, #tpu.memory_space<vmem>>, vector<1x1x32xbf16>
      %21 = vector.shape_cast %20 : vector<1x1x32xbf16> to vector<1x32xbf16>
      %22 = arith.extf %21 : vector<1x32xbf16> to vector<1x32xf32>
      %23 = vector.extract_strided_slice %19 {offsets = [0, 0], sizes = [7, 32], strides = [1, 1]} : vector<8x32xf32> to vector<7x32xf32>
      %24 = tpu.concatenate %22, %23 in 0 : vector<1x32xf32>, vector<7x32xf32> -> vector<8x32xf32>
      %25 = arith.subf %24, %19 : vector<8x32xf32>
      %c0_19 = arith.constant 0 : index
      %c0_20 = arith.constant 0 : index
      %26 = vector.load %arg4[%c0_19, %c0_20] : memref<1x32xf32, #tpu.memory_space<vmem>>, vector<1x32xf32>
      %c0_21 = arith.constant 0 : index
      %c0_22 = arith.constant 0 : index
      %27 = vector.load %arg5[%c0_21, %c0_22] : memref<1x32xf32, #tpu.memory_space<vmem>>, vector<1x32xf32>
      %28 = vector.broadcast %26 : vector<1x32xf32> to vector<8x32xf32>
      %29 = arith.mulf %25, %28 : vector<8x32xf32>
      %30 = arith.addf %19, %29 : vector<8x32xf32>
      %31 = arith.truncf %30 : vector<8x32xf32> to vector<8x32xbf16>
      %c0_23 = arith.constant 0 : index
      %c0_24 = arith.constant 0 : index
      %32 = vector.load %arg12[%c0_23, %c0_24] : memref<8x32xbf16, #tpu.memory_space<vmem>>, vector<8x32xbf16>
      tpu.vector_store %arg12[%c0_23, %c0_24], %31 {strides = array<i32>} : memref<8x32xbf16, #tpu.memory_space<vmem>>, vector<8x32xbf16>,
      %33 = vector.broadcast %27 : vector<1x32xf32> to vector<8x32xf32>
      %34 = arith.mulf %25, %33 : vector<8x32xf32>
      %35 = arith.addf %19, %34 : vector<8x32xf32>
      %36 = arith.truncf %35 : vector<8x32xf32> to vector<8x32xbf16>
      %c0_25 = arith.constant 0 : index
      %c0_26 = arith.constant 0 : index
      %37 = vector.load %arg8[%c0_25, %c0_26] : memref<32x32xbf16, #tpu.memory_space<vmem>>, vector<32x32xbf16>
      %cst_27 = arith.constant dense<0.000000e+00> : vector<8x32xf32>
      %38 = tpu.matmul %36, %37, %cst_27 {dimension_numbers = #tpu.dot_dimension_numbers<[1], [0], [0], [1], [0, 0, 1, 1], [], []>} : vector<8x32xbf16>, vector<32x32xbf16>, vector<8x32xf32> -> vector<8x32xf32>
      %39 = arith.negf %38 : vector<8x32xf32>
      %40 = math.exp %39 : vector<8x32xf32>
      %cst_28 = arith.constant 1.000000e+00 : f32
      %41 = vector.broadcast %cst_28 : f32 to vector<8x32xf32>
      %42 = arith.addf %41, %40 : vector<8x32xf32>
      %43 = arith.divf %41, %42 : vector<8x32xf32>
      %44 = arith.truncf %43 : vector<8x32xf32> to vector<8x32xbf16>
      %c0_29 = arith.constant 0 : index
      %c0_30 = arith.constant 0 : index
      %45 = vector.load %arg11[%c0_29, %c0_30] : memref<8x32xbf16, #tpu.memory_space<vmem>>, vector<8x32xbf16>
      tpu.vector_store %arg11[%c0_29, %c0_30], %44 {strides = array<i32>} : memref<8x32xbf16, #tpu.memory_space<vmem>>, vector<8x32xbf16>,
      %cst_31 = arith.constant 0.000000e+00 : f32
      %46 = vector.broadcast %cst_31 : f32 to vector<8x32xf32>
      %c0_32 = arith.constant 0 : index
      %c0_33 = arith.constant 0 : index
      %47 = vector.load %arg10[%c0_32, %c0_33] : memref<8x32xf32, #tpu.memory_space<vmem>>, vector<8x32xf32>
      tpu.vector_store %arg10[%c0_32, %c0_33], %46 {strides = array<i32>} : memref<8x32xf32, #tpu.memory_space<vmem>>, vector<8x32xf32>,
    } else {
    }
    %c0 = arith.constant 0 : index
    %c0_1 = arith.constant 0 : index
    %3 = vector.load %arg12[%c0, %c0_1] : memref<8x32xbf16, #tpu.memory_space<vmem>>, vector<8x32xbf16>
    %c0_2 = arith.constant 0 : index
    %c0_3 = arith.constant 0 : index
    %4 = vector.load %arg6[%c0_2, %c0_3] : memref<32x64xbf16, #tpu.memory_space<vmem>>, vector<32x64xbf16>
    %cst = arith.constant dense<0.000000e+00> : vector<8x64xf32>
    %5 = tpu.matmul %3, %4, %cst {dimension_numbers = #tpu.dot_dimension_numbers<[1], [0], [0], [1], [0, 0, 1, 1], [], []>} : vector<8x32xbf16>, vector<32x64xbf16>, vector<8x64xf32> -> vector<8x64xf32>
    %cst_4 = arith.constant 0.000000e+00 : f32
    %6 = vector.broadcast %cst_4 : f32 to vector<8x64xf32>
    %7 = arith.maximumf %5, %6 : vector<8x64xf32>
    %8 = arith.mulf %7, %7 : vector<8x64xf32>
    %c0_5 = arith.constant 0 : index
    %c0_6 = arith.constant 0 : index
    %9 = vector.load %arg10[%c0_5, %c0_6] : memref<8x32xf32, #tpu.memory_space<vmem>>, vector<8x32xf32>
    %10 = arith.truncf %8 : vector<8x64xf32> to vector<8x64xbf16>
    %c0_7 = arith.constant 0 : index
    %c0_8 = arith.constant 0 : index
    %11 = vector.load %arg7[%c0_7, %c0_8] : memref<64x32xbf16, #tpu.memory_space<vmem>>, vector<64x32xbf16>
    %cst_9 = arith.constant dense<0.000000e+00> : vector<8x32xf32>
    %12 = tpu.matmul %10, %11, %cst_9 {dimension_numbers = #tpu.dot_dimension_numbers<[1], [0], [0], [1], [0, 0, 1, 1], [], []>} : vector<8x64xbf16>, vector<64x32xbf16>, vector<8x32xf32> -> vector<8x32xf32>
    %13 = arith.addf %9, %12 : vector<8x32xf32>
    %c0_10 = arith.constant 0 : index
    %c0_11 = arith.constant 0 : index
    %14 = vector.load %arg10[%c0_10, %c0_11] : memref<8x32xf32, #tpu.memory_space<vmem>>, vector<8x32xf32>
    tpu.vector_store %arg10[%c0_10, %c0_11], %13 {strides = array<i32>} : memref<8x32xf32, #tpu.memory_space<vmem>>, vector<8x32xf32>,
    %c0_i32_12 = arith.constant 0 : i32
    %15 = arith.cmpi eq, %arg1, %c0_i32_12 : i32
    %16 = arith.extui %15 : i1 to i32
    %c0_i32_13 = arith.constant 0 : i32
    %17 = arith.cmpi ne, %16, %c0_i32_13 : i32
    scf.if %17 {
      %c0_14 = arith.constant 0 : index
      %c0_15 = arith.constant 0 : index
      %18 = vector.load %arg11[%c0_14, %c0_15] : memref<8x32xbf16, #tpu.memory_space<vmem>>, vector<8x32xbf16>
      %19 = arith.extf %18 : vector<8x32xbf16> to vector<8x32xf32>
      %c0_16 = arith.constant 0 : index
      %c0_17 = arith.constant 0 : index
      %20 = vector.load %arg10[%c0_16, %c0_17] : memref<8x32xf32, #tpu.memory_space<vmem>>, vector<8x32xf32>
      %21 = arith.mulf %19, %20 : vector<8x32xf32>
      %c0_18 = arith.constant 0 : index
      %c0_19 = arith.constant 0 : index
      %22 = vector.load %arg9[%c0_18, %c0_19] : memref<8x32xf32, #tpu.memory_space<vmem>>, vector<8x32xf32>
      tpu.vector_store %arg9[%c0_18, %c0_19], %21 {strides = array<i32>} : memref<8x32xf32, #tpu.memory_space<vmem>>, vector<8x32xf32>,
    } else {
    }
    return
  }
  func.func @transform_0(%arg0: i32, %arg1: i32) -> (i32, i32) {
    %c0_i32 = arith.constant 0 : i32
    %c0_i32_0 = arith.constant 0 : i32
    return %arg0, %c0_i32 : i32, i32
  }
  func.func @transform_1(%arg0: i32, %arg1: i32) -> (i32, i32, i32) {
    %c0_i32 = arith.constant 0 : i32
    %c0_i32_0 = arith.constant 0 : i32
    %c0_i32_1 = arith.constant 0 : i32
    return %arg0, %c0_i32, %c0_i32_0 : i32, i32, i32
  }
  func.func @transform_2(%arg0: i32, %arg1: i32) -> (i32, i32) {
    %c0_i32 = arith.constant 0 : i32
    %c0_i32_0 = arith.constant 0 : i32
    %c0_i32_1 = arith.constant 0 : i32
    return %c0_i32, %c0_i32_0 : i32, i32
  }
  func.func @transform_3(%arg0: i32, %arg1: i32) -> (i32, i32) {
    %c0_i32 = arith.constant 0 : i32
    %c0_i32_0 = arith.constant 0 : i32
    %c0_i32_1 = arith.constant 0 : i32
    return %c0_i32, %c0_i32_0 : i32, i32
  }
  func.func @transform_4(%arg0: i32, %arg1: i32) -> (i32, i32) {
    %c0_i32 = arith.constant 0 : i32
    %c0_i32_0 = arith.constant 0 : i32
    return %c0_i32, %arg1 : i32, i32
  }
  func.func @transform_5(%arg0: i32, %arg1: i32) -> (i32, i32) {
    %c0_i32 = arith.constant 0 : i32
    %c0_i32_0 = arith.constant 0 : i32
    return %arg1, %c0_i32 : i32, i32
  }
  func.func @transform_6(%arg0: i32, %arg1: i32) -> (i32, i32) {
    %c0_i32 = arith.constant 0 : i32
    %c0_i32_0 = arith.constant 0 : i32
    %c0_i32_1 = arith.constant 0 : i32
    return %c0_i32, %c0_i32_0 : i32, i32
  }
  func.func @transform_7(%arg0: i32, %arg1: i32) -> (i32, i32) {
    %c0_i32 = arith.constant 0 : i32
    %c0_i32_0 = arith.constant 0 : i32
    return %arg0, %c0_i32 : i32, i32
  }
}

</mosaic_0001>

<bundles_post_ra>
// kernel: tpu_custom_call.1
= control target key start
LH: loop header
LB: loop body
LE: loop exit
PB: predicated region body
PF: predicated region fallthrough
CT: control target
= control target key end

     0   :  { %12 = vsyncpa [#allocation6], 0  ;;  %s1129_s0 = inlined_call_operand.vmem [shape: bf16[16,32], index: 0, kind: input, shape index: {}]   ;;  %s1130_s1 = inlined_call_operand.vmem [shape: bf16[2,1,32], index: 1, kind: input, shape index: {}]   ;;  %s1131_s2 = inlined_call_operand.vmem [shape: f32[1,32], index: 2, kind: input, shape index: {}]   ;;  %s1132_s3 = inlined_call_operand.vmem [shape: f32[1,32], index: 3, kind: input, shape index: {}]   ;;  %s1133_s4 = inlined_call_operand.vmem [shape: bf16[32,64], index: 4, kind: input, shape index: {}]   ;;  %s1134_s5 = inlined_call_operand.vmem [shape: bf16[64,32], index: 5, kind: input, shape index: {}]   ;;  %s1135_s6 = inlined_call_operand.vmem [shape: bf16[32,32], index: 6, kind: input, shape index: {}]   ;;  %s1136_s7 = inlined_call_operand.hbm [shape: f32[16,32], index: 7, kind: output, shape index: {}]  }
   0x1   :  { %14 = vsyncpa [#allocation6 + $0x1], 0  ;;  %s974_s24 = smov 0   ;;  %s976_s25 = smov 0  }
   0x2   :  { %s978_s26 = smov 0   ;;  %s980_s27 = smov 0  }
   0x3   :  { %s982_s28 = smov 0   ;;  %s984_s29 = smov 0  }
   0x4 LB: > { %s716_s30 = sadd.s32 4294967295, %s929_s29   ;;  %s717_s8 = sadd.s32 4294967294, %s929_s29   ;;  %s929_s29 = sphi %s984_s29, %s20_s29   ;;  %s925_s28 = sphi %s982_s28, %s1143_s28   ;;  %s921_s27 = sphi %s980_s27, %s1142_s27   ;;  %s917_s26 = sphi %s978_s26, %s1141_s26   ;;  %s913_s25 = sphi %s976_s25, %s1140_s25   ;;  %s909_s24 = sphi %s974_s24, %s1139_s24  }
   0x5   : > { %s32_s9 = sadd.s32 1, %s925_s28  ;;  %s206_s10 = sadd.s32 1, %s917_s26 }
   0x6   : > { %p34_p0 = scmp.ge.s32.totalorder %s32_s9, 2  ;;  %p216_p1 = scmp.ne.s32.totalorder %s917_s26, %s913_s25 }
   0x7   : > { %p217_p2 = scmp.eq.s32.totalorder %s716_s30, 1  ;;  %p222_p3 = scmp.ne.s32.totalorder %s913_s25, %s909_s24 }
   0x8   : > { %s1145_s9 = smov (%p34_p0, %s32_s9), 0  ;;  %p223_p5 = scmp.eq.s32.totalorder %s717_s8, 1 }
   0x9   : > { %p1014_p4 = por %p217_p2, %p216_p1  ;;  %s203_s12 = ssub.s32 %s925_s28, %s1145_s9 }
   0xa   : > { %p722_p6 = scmp.ge.s32.totalorder %s929_s29, 1  ;;  %p204_p7 = scmp.eq.s32.totalorder %s203_s12, 0 }
   0xb   : > { %p1021_p8 = por %p223_p5, %p222_p3  ;;  %p279_p9 = scmp.lt.s32.totalorder %s929_s29, 3 }
   0xc   : > { %s1027_s14 = scalar_select %p204_p7, %s917_s26, %s206_s10  }
   0xd   : > { %p280_p10 = pnand %p722_p6, %p279_p9 }
   0xe   : > { %v839_v0 = vld [vmem:[%s1135_s6] sm:$0xff] (!%p280_p10)   ;;  %v931_v1 = vmov (!%p280_p10), 0.0   ;;  %v840_v2 = vld [vmem:[%s1135_s6 + $0x8] sm:$0xff] (!%p280_p10)   ;;  %vm932_vm0 = vmmov (!%p280_p10), 0   ;;  %p322_p11 = scmp.lt.s32.totalorder (!%p280_p10), %s921_s27, 1  ;;  %vm392_vm1 = vcmask (!%p280_p10), 261120  }
   0xf   : > { %283 = sbr.rel (%p280_p10) target bundleno = 504 (0x1f8), region = 48  ;;  %754 = vmatprep.subr.bf16.mxu1 (!%p280_p10), %v931_v1  ;;  %770 = vmatprep.subr.bf16.mxu0 (!%p280_p10), %v931_v1  ;;  %444 = vst.msk [vmem:[#allocation2] sm:$0xff] (!%p280_p10), %vm392_vm1, %v931_v1  ;;  %vm351_vm2 = vcmask (!%p280_p10), 1040384   ;;  %v725_v9 = vld [vmem:[%s1131_s2] ss:$0 sm:$0xff] (!%p280_p10)  ;;  %vm365_vm3 = vcmask (!%p280_p10), 257024  }
  0x10   : > { %755 = vmatpush3.bf16.msra.mxu1 (!%p280_p10), %v839_v0  ;;  %758 = vmatprep.mubr.msk.bf16.mxu1 (!%p280_p10), %vm932_vm0, %v931_v1  ;;  %v726_v10 = vld [vmem:[%s1132_s3] ss:$0 sm:$0xff] (!%p280_p10)  ;;  %v842_v19 = vld [vmem:[%s1133_s4 + $0x8] sm:$0xff] (!%p280_p10)   ;;  %v845_v23 = vld [vmem:[%s1134_s5 + $0x10] sm:$0xff] (!%p280_p10)   ;;  %vm542_vm4 = vcmask (!%p280_p10), 523264   ;;  %s319_s17 = sand.u32 (!%p280_p10), 1, %s913_s25  }
  0x11   : > { %756 = vmatprep.subr.bf16.mxu1 (!%p280_p10), %v931_v1  ;;  %778 = vmatprep.mubr.msk.bf16.mxu0 (!%p280_p10), %vm932_vm0, %v931_v1  ;;  %v841_v16 = vld [vmem:[%s1133_s4] sm:$0xff] (!%p280_p10)   ;;  %v844_v22 = vld [vmem:[%s1134_s5 + $0x8] sm:$0xff] (!%p280_p10)   ;;  %v846_v24 = vld [vmem:[%s1134_s5 + $0x18] sm:$0xff] (!%p280_p10)   ;;  %s723_s18 = sshll.u32 (!%p280_p10), %s319_s17, 3  ;;  %s597_s8 = scalar_lea.sflag (!%p280_p10), [#allocation6], %s319_s17 }
  0x12   : > { %v843_v21 = vld [vmem:[%s1134_s5] sm:$0xff] (!%p280_p10)  }
  0x13   : > { %771 = vmatpush3.bf16.msra.mxu0 (!%p280_p10), %v843_v21 }
  0x14   : > { %757 = vmatpush3.bf16.msra.mxu1 (!%p280_p10), %v840_v2  ;;  %772 = vmatprep.subr.bf16.mxu0 (!%p280_p10), %v931_v1 }
  0x15   : > { %762 = vmatprep.subr.bf16.mxu1 (!%p280_p10), %v931_v1 }
  0x16   : > { %s323_s19 = scalar_select %p322_p11, %s921_s27, 1  ;;  %v508_v41 = vld [vmem:[#allocation2] sm:$0xff] }
  0x17   : > { %773 = vmatpush3.bf16.msra.mxu0 %v844_v22 }
  0x18   : > { %s724_s20 = sshll.u32 %s323_s19, 2  ;;  %s328_s23 = scalar_lea.vmem %s1130_s1, %s323_s19  ;;  %774 = vmatprep.subr.bf16.mxu0 %v931_v1 }
  0x19   : > { %s325_s10 = scalar_lea.vmem %s1129_s0, %s724_s20  ;;  %v346_v3 = vld [vmem:[%s328_s23] sm:$0x1]  ;;  %s740_s19 = sshll.u32 %s921_s27, 7 }
  0x1a   : > { %v344_v4 = vld [vmem:[%s325_s10] sm:$0xf]  ;;  %v347_v6 = vunpack.c.l.bf16 %v346_v3  ;;  %s321_s20 = scalar_lea.vmem [#allocation5], %s723_s18  ;;  %s1081_s30 = scalar_lea.hbm %s1136_s7, %s740_s19 }
  0x1b   : > { %v345_v5 = vunpack.c.l.bf16 %v344_v4  ;;  %775 = vmatpush3.bf16.msra.mxu0 %v845_v23  ;;  %s610_s21 = sshll.u32 %s321_s20, 4  ;;  %s933_s27 = smov [#allocation5]   ;;  %s1083_s21 = int_to_ptr.vmem [resolvable:$true] %s610_s21 }
  0x1c   : > { %776 = vmatprep.subr.bf16.mxu0 %v931_v1  ;;  %s851_s10 = scalar_lea.vmem %s1083_s21, 128  ;;  %s855_s12 = sshll.u32 %s933_s27, 4  ;;  %s856_s12 = int_to_ptr.vmem [resolvable:$false] %s855_s12 }
  0x1d   : > { %v349_v7 = vrot.slane %v345_v5, 7  ;;  %p852_p12 = scmp.ne.s32.totalorder %s1083_s21, %s851_s10  ;;  %s857_s15 = scalar_lea.vmem %s856_s12, 256 }
  0x1e   : > { %p858_p1 = scmp.lt.s32.totalorder %s1083_s21, %s856_s12  ;;  %p859_p2 = scmp.lt.s32.totalorder %s857_s15, %s851_s10 }
  0x1f   : > { %v352_v8 = vsel %vm351_vm2, %v347_v6, %v349_v7  ;;  %777 = vmatpush3.bf16.msra.mxu0 %v846_v24  ;;  %p853_p13 = pnand %p852_p12, %p1014_p4 }
  0x20   : > { %v353_v11 = vsub.f32 %v352_v8, %v345_v5  ;;  %p860_p3 = por %p859_p2, %p858_p1 }
  0x21   : > { %p854_p0 = pneg %p853_p13 }
  0x22   : > { %v362_v12 = vmul.f32 %v725_v9, %v353_v11  ;;  %v373_v13 = vmul.f32 %v726_v10, %v353_v11 }
  0x23   : > { %p861_p5 = pnand %p860_p3, %p854_p0 }
  0x24   : > { %v363_v14 = vadd.f32 %v362_v12, %v345_v5  ;;  %v374_v15 = vadd.f32 %v373_v13, %v345_v5 }
  0x26   : > { %v364_v17 = vpack.c.bf16 %v363_v14, %v363_v14  ;;  %v375_v18 = vpack.c.bf16 %v374_v15, %v374_v15 }
  0x28   : > { %366 = vst.msk [vmem:[#allocation4] sm:$0xf] %vm365_vm3, %v364_v17  ;;  %759 = vmatmul.mubr.msk.bf16.vlgmr.msra.gmra.mrb[0].mxu1 %vm392_vm1, %v375_v18 }
  0x29   : > { %763 = vmatpush3.bf16.msra.mxu1 %v841_v16  ;;  %766 = vmatprep.mubr.msk.bf16.mxu1 %vm932_vm0, %v931_v1 }
  0x2a   : > { %764 = vmatprep.subr.bf16.mxu1 %v931_v1 }
  0x2d   : > { %765 = vmatpush3.bf16.msra.mxu1 %v842_v19 }
  0x2f   : > { %v445_v20 = vld [vmem:[#allocation4] sm:$0xf] }
  0x30   : > { %767 = vmatmul.mubr.msk.bf16.vlgmr.msra.gmra.mrb[4].mxu1 %vm392_vm1, %v445_v20 }
  0xfb   : > { %v430_v25 = vpop.f32.mrb[0].mxu1 }
  0xfc   : > { %v730_v26 = vmul.f32 -1.442695, %v430_v25  ;;  %v760_v27 = vpop.f32.mrb[1].mxu1 }
  0xfd   : > { %v433_v28 = vpop.f32.mrb[2].mxu1 }
  0xfe   : > { %847 = vpow2.f32 %v730_v26  ;;  %v761_v29 = vpop.f32.mrb[3].mxu1 }
 0x103   : > { %v500_v30 = vpop.f32.mrb[4].mxu1 }
 0x104   : > { %v506_v31 = vmax.f32 %v500_v30, 0.0  ;;  %v768_v32 = vpop.f32.mrb[5].mxu1 }
 0x105   : > { %v503_v33 = vpop.f32.mrb[6].mxu1 }
 0x106   : > { %v507_v34 = vmul.f32 %v506_v31, %v506_v31  ;;  %v769_v35 = vpop.f32.mrb[7].mxu1 }
 0x108   : > { %v848_v36 = vpop.eup %847  ;;  %v509_v37 = vpack.c.bf16 %v507_v34, %v507_v34 }
 0x109   : > { %v439_v38 = vadd.f32 1.0, %v848_v36 }
 0x10a   : > { %779 = vmatmul.mubr.msk.bf16.vlgmr.msra.gmra.mrb[0].mxu0 %vm542_vm4, %v509_v37 }
 0x10b   : > { %849 = vrcp.f32 %v439_v38 }
 0x115   : > { %v850_v39 = vpop.eup %849 }
 0x116   : > { %v442_v40 = vpack.c.bf16 %v850_v39, %v850_v39 }
 0x118   : > { %443 = vst.msk [vmem:[#allocation3] sm:$0xf] %vm365_vm3, %v442_v40 }
 0x11f   : > { %v591_v47 = vld [vmem:[#allocation3] sm:$0xf] }
 0x120   : > { %v592_v48 = vunpack.c.l.bf16 %v591_v47 }
 0x1dd   : > { %v580_v42 = vpop.f32.mrb[0].mxu0 }
 0x1de   : > { %v586_v43 = vadd.f32 %v580_v42, %v508_v41  ;;  %v780_v44 = vpop.f32.mrb[1].mxu0 }
 0x1df   : > { %v583_v45 = vpop.f32.mrb[2].mxu0 }
 0x1e0   : > { %587 = vst.msk [vmem:[#allocation2] sm:$0xff] %vm392_vm1, %v586_v43  ;;  %v781_v46 = vpop.f32.mrb[3].mxu0 }
 0x1e7   : > { %v593_v49 = vld [vmem:[#allocation2] sm:$0xff] }
 0x1e8   : > { %v594_v50 = vmul.f32 %v593_v49, %v592_v48 }
 0x1ea   : > { %595 = vst.msk [vmem:[%s321_s20] sm:$0xff] %vm392_vm1, %v594_v50 }
 0x1eb   : > { %864 = shalt.err (!%p861_p5)
}
 0x1ec   : > { %s865_s16 = scalar_lea.hbm %s1081_s30, 128  ;;  %s869_s19 = scalar_lea.hbm %s1136_s7, 256 }
 0x1ed   : > { %p866_p6 = scmp.ne.s32.totalorder %s1081_s30, %s865_s16  ;;  %p870_p10 = scmp.lt.u32.totalorder %s1081_s30, %s1136_s7 }
 0x1ee   : > { %p871_p11 = scmp.lt.u32.totalorder %s869_s19, %s865_s16  ;;  %p873_p13 = scmp.lt.u32.totalorder %s865_s16, %s1081_s30 }
 0x1ef   : > { %p867_p7 = pnand %p866_p6, %p1014_p4 }
 0x1f0   : > { %p872_p12 = por %p871_p11, %p870_p10 }
 0x1f1   : > { %p868_p9 = pneg %p867_p7 }
 0x1f2   : > { %p874_p0 = por %p873_p13, %p872_p12 }
 0x1f4   : > { %p875_p1 = pnand %p874_p0, %p868_p9 }
 0x1f6   : > { %878 = shalt.err (!%p875_p1)
}
 0x1f7   : > { %782 = dma.vmem_to_hbm [thread:$0]  (%p1014_p4), %s1083_s21, 128, %s1081_s30, %s597_s8  }
 0x1f8 PF: > { %p788_p2 = scmp.ge.s32.totalorder %s929_s29, 2  ;;  %s622_s23 = sand.u32 1, %s909_s24  }
 0x1f9   : > { %s623_s10 = scalar_lea.sflag [#allocation6], %s622_s23 }
 0x1fa   : > { %p785_p3 = pnand %p788_p2, %p1021_p8 }
 0x1fc   : > { %904 = dma.done.wait (!%p785_p3), %s623_s10, 128  }
 0x1fd   : > { %906 = vsyncadd (!%p785_p3), %s623_s10, 4294967168  ;;  %s20_s29 = sadd.s32 1, %s929_s29   ;;  %s1139_s24 = smov %s913_s25 }
 0x1fe   : > { %p17_p5 = scmp.ge.s32.totalorder %s20_s29, 4   ;;  %s1140_s25 = smov %s917_s26 }
 0x1ff   : > { %s1141_s26 = smov %s1027_s14  ;;  %s1142_s27 = smov %s925_s28 }
 0x200   : > { %s1143_s28 = smov %s1145_s9  ;;  %19 = sbr.rel (!%p17_p5) target bundleno = 4 (0x4), region = 100 }
 0x207   :  { %628 = vsyncpa [#allocation6], 1 }
 0x208   :  { %630 = vsyncpa [#allocation6 + $0x1], 1 }

// kernel: tpu_custom_call.1
= control target key start
LH: loop header
LB: loop body
LE: loop exit
PB: predicated region body
PF: predicated region fallthrough
CT: control target
= control target key end

     0   :  { %12 = vsyncpa [#allocation6], 0  ;;  %s1129_s0 = inlined_call_operand.vmem [shape: bf16[16,32], index: 0, kind: input, shape index: {}]   ;;  %s1130_s1 = inlined_call_operand.vmem [shape: bf16[2,1,32], index: 1, kind: input, shape index: {}]   ;;  %s1131_s2 = inlined_call_operand.vmem [shape: f32[1,32], index: 2, kind: input, shape index: {}]   ;;  %s1132_s3 = inlined_call_operand.vmem [shape: f32[1,32], index: 3, kind: input, shape index: {}]   ;;  %s1133_s4 = inlined_call_operand.vmem [shape: bf16[32,64], index: 4, kind: input, shape index: {}]   ;;  %s1134_s5 = inlined_call_operand.vmem [shape: bf16[64,32], index: 5, kind: input, shape index: {}]   ;;  %s1135_s6 = inlined_call_operand.vmem [shape: bf16[32,32], index: 6, kind: input, shape index: {}]   ;;  %s1136_s7 = inlined_call_operand.hbm [shape: f32[16,32], index: 7, kind: output, shape index: {}]  }
   0x1   :  { %14 = vsyncpa [#allocation6 + $0x1], 0  ;;  %s974_s24 = smov 0   ;;  %s976_s25 = smov 0  }
   0x2   :  { %s978_s26 = smov 0   ;;  %s980_s27 = smov 0  }
   0x3   :  { %s982_s28 = smov 0   ;;  %s984_s29 = smov 0  }
   0x4 LB: > { %s716_s30 = sadd.s32 4294967295, %s929_s29   ;;  %s717_s8 = sadd.s32 4294967294, %s929_s29   ;;  %s929_s29 = sphi %s984_s29, %s20_s29   ;;  %s925_s28 = sphi %s982_s28, %s1143_s28   ;;  %s921_s27 = sphi %s980_s27, %s1142_s27   ;;  %s917_s26 = sphi %s978_s26, %s1141_s26   ;;  %s913_s25 = sphi %s976_s25, %s1140_s25   ;;  %s909_s24 = sphi %s974_s24, %s1139_s24  }
   0x5   : > { %s32_s9 = sadd.s32 1, %s925_s28  ;;  %s206_s10 = sadd.s32 1, %s917_s26 }
   0x6   : > { %p34_p0 = scmp.ge.s32.totalorder %s32_s9, 2  ;;  %p216_p1 = scmp.ne.s32.totalorder %s917_s26, %s913_s25 }
   0x7   : > { %p217_p2 = scmp.eq.s32.totalorder %s716_s30, 1  ;;  %p222_p3 = scmp.ne.s32.totalorder %s913_s25, %s909_s24 }
   0x8   : > { %s1145_s9 = smov (%p34_p0, %s32_s9), 0  ;;  %p223_p5 = scmp.eq.s32.totalorder %s717_s8, 1 }
   0x9   : > { %p1014_p4 = por %p217_p2, %p216_p1  ;;  %s203_s12 = ssub.s32 %s925_s28, %s1145_s9 }
   0xa   : > { %p722_p6 = scmp.ge.s32.totalorder %s929_s29, 1  ;;  %p204_p7 = scmp.eq.s32.totalorder %s203_s12, 0 }
   0xb   : > { %p1021_p8 = por %p223_p5, %p222_p3  ;;  %p279_p9 = scmp.lt.s32.totalorder %s929_s29, 3 }
   0xc   : > { %s1027_s14 = scalar_select %p204_p7, %s917_s26, %s206_s10  }
   0xd   : > { %p280_p10 = pnand %p722_p6, %p279_p9 }
   0xe   : > { %v839_v0 = vld [vmem:[%s1135_s6] sm:$0xff] (!%p280_p10)   ;;  %v931_v1 = vmov (!%p280_p10), 0.0   ;;  %v840_v2 = vld [vmem:[%s1135_s6 + $0x8] sm:$0xff] (!%p280_p10)   ;;  %vm932_vm0 = vmmov (!%p280_p10), 0   ;;  %p322_p11 = scmp.lt.s32.totalorder (!%p280_p10), %s921_s27, 1  ;;  %vm392_vm1 = vcmask (!%p280_p10), 261120  }
   0xf   : > { %283 = sbr.rel (%p280_p10) target bundleno = 504 (0x1f8), region = 48  ;;  %754 = vmatprep.subr.bf16.mxu1 (!%p280_p10), %v931_v1  ;;  %770 = vmatprep.subr.bf16.mxu0 (!%p280_p10), %v931_v1  ;;  %444 = vst.msk [vmem:[#allocation2] sm:$0xff] (!%p280_p10), %vm392_vm1, %v931_v1  ;;  %vm351_vm2 = vcmask (!%p280_p10), 1040384   ;;  %v725_v9 = vld [vmem:[%s1131_s2] ss:$0 sm:$0xff] (!%p280_p10)  ;;  %vm365_vm3 = vcmask (!%p280_p10), 257024  }
  0x10   : > { %755 = vmatpush3.bf16.msra.mxu1 (!%p280_p10), %v839_v0  ;;  %758 = vmatprep.mubr.msk.bf16.mxu1 (!%p280_p10), %vm932_vm0, %v931_v1  ;;  %v726_v10 = vld [vmem:[%s1132_s3] ss:$0 sm:$0xff] (!%p280_p10)  ;;  %v842_v19 = vld [vmem:[%s1133_s4 + $0x8] sm:$0xff] (!%p280_p10)   ;;  %v845_v23 = vld [vmem:[%s1134_s5 + $0x10] sm:$0xff] (!%p280_p10)   ;;  %vm542_vm4 = vcmask (!%p280_p10), 523264   ;;  %s319_s17 = sand.u32 (!%p280_p10), 1, %s913_s25  }
  0x11   : > { %756 = vmatprep.subr.bf16.mxu1 (!%p280_p10), %v931_v1  ;;  %778 = vmatprep.mubr.msk.bf16.mxu0 (!%p280_p10), %vm932_vm0, %v931_v1  ;;  %v841_v16 = vld [vmem:[%s1133_s4] sm:$0xff] (!%p280_p10)   ;;  %v844_v22 = vld [vmem:[%s1134_s5 + $0x8] sm:$0xff] (!%p280_p10)   ;;  %v846_v24 = vld [vmem:[%s1134_s5 + $0x18] sm:$0xff] (!%p280_p10)   ;;  %s723_s18 = sshll.u32 (!%p280_p10), %s319_s17, 3  ;;  %s597_s8 = scalar_lea.sflag (!%p280_p10), [#allocation6], %s319_s17 }
  0x12   : > { %v843_v21 = vld [vmem:[%s1134_s5] sm:$0xff] (!%p280_p10)  }
  0x13   : > { %771 = vmatpush3.bf16.msra.mxu0 (!%p280_p10), %v843_v21 }
  0x14   : > { %757 = vmatpush3.bf16.msra.mxu1 (!%p280_p10), %v840_v2  ;;  %772 = vmatprep.subr.bf16.mxu0 (!%p280_p10), %v931_v1 }
  0x15   : > { %762 = vmatprep.subr.bf16.mxu1 (!%p280_p10), %v931_v1 }
  0x16   : > { %s323_s19 = scalar_select %p322_p11, %s921_s27, 1  ;;  %v508_v41 = vld [vmem:[#allocation2] sm:$0xff] }
  0x17   : > { %773 = vmatpush3.bf16.msra.mxu0 %v844_v22 }
  0x18   : > { %s724_s20 = sshll.u32 %s323_s19, 2  ;;  %s328_s23 = scalar_lea.vmem %s1130_s1, %s323_s19  ;;  %774 = vmatprep.subr.bf16.mxu0 %v931_v1 }
  0x19   : > { %s325_s10 = scalar_lea.vmem %s1129_s0, %s724_s20  ;;  %v346_v3 = vld [vmem:[%s328_s23] sm:$0x1]  ;;  %s740_s19 = sshll.u32 %s921_s27, 7 }
  0x1a   : > { %v344_v4 = vld [vmem:[%s325_s10] sm:$0xf]  ;;  %v347_v6 = vunpack.c.l.bf16 %v346_v3  ;;  %s321_s20 = scalar_lea.vmem [#allocation5], %s723_s18  ;;  %s1081_s30 = scalar_lea.hbm %s1136_s7, %s740_s19 }
  0x1b   : > { %v345_v5 = vunpack.c.l.bf16 %v344_v4  ;;  %775 = vmatpush3.bf16.msra.mxu0 %v845_v23  ;;  %s610_s21 = sshll.u32 %s321_s20, 4  ;;  %s933_s27 = smov [#allocation5]   ;;  %s1083_s21 = int_to_ptr.vmem [resolvable:$true] %s610_s21 }
  0x1c   : > { %776 = vmatprep.subr.bf16.mxu0 %v931_v1  ;;  %s851_s10 = scalar_lea.vmem %s1083_s21, 128  ;;  %s855_s12 = sshll.u32 %s933_s27, 4  ;;  %s856_s12 = int_to_ptr.vmem [resolvable:$false] %s855_s12 }
  0x1d   : > { %v349_v7 = vrot.slane %v345_v5, 7  ;;  %p852_p12 = scmp.ne.s32.totalorder %s1083_s21, %s851_s10  ;;  %s857_s15 = scalar_lea.vmem %s856_s12, 256 }
  0x1e   : > { %p858_p1 = scmp.lt.s32.totalorder %s1083_s21, %s856_s12  ;;  %p859_p2 = scmp.lt.s32.totalorder %s857_s15, %s851_s10 }
  0x1f   : > { %v352_v8 = vsel %vm351_vm2, %v347_v6, %v349_v7  ;;  %777 = vmatpush3.bf16.msra.mxu0 %v846_v24  ;;  %p853_p13 = pnand %p852_p12, %p1014_p4 }
  0x20   : > { %v353_v11 = vsub.f32 %v352_v8, %v345_v5  ;;  %p860_p3 = por %p859_p2, %p858_p1 }
  0x21   : > { %p854_p0 = pneg %p853_p13 }
  0x22   : > { %v362_v12 = vmul.f32 %v725_v9, %v353_v11  ;;  %v373_v13 = vmul.f32 %v726_v10, %v353_v11 }
  0x23   : > { %p861_p5 = pnand %p860_p3, %p854_p0 }
  0x24   : > { %v363_v14 = vadd.f32 %v362_v12, %v345_v5  ;;  %v374_v15 = vadd.f32 %v373_v13, %v345_v5 }
  0x26   : > { %v364_v17 = vpack.c.bf16 %v363_v14, %v363_v14  ;;  %v375_v18 = vpack.c.bf16 %v374_v15, %v374_v15 }
  0x28   : > { %366 = vst.msk [vmem:[#allocation4] sm:$0xf] %vm365_vm3, %v364_v17  ;;  %759 = vmatmul.mubr.msk.bf16.vlgmr.msra.gmra.mrb[0].mxu1 %vm392_vm1, %v375_v18 }
  0x29   : > { %763 = vmatpush3.bf16.msra.mxu1 %v841_v16  ;;  %766 = vmatprep.mubr.msk.bf16.mxu1 %vm932_vm0, %v931_v1 }
  0x2a   : > { %764 = vmatprep.subr.bf16.mxu1 %v931_v1 }
  0x2d   : > { %765 = vmatpush3.bf16.msra.mxu1 %v842_v19 }
  0x2f   : > { %v445_v20 = vld [vmem:[#allocation4] sm:$0xf] }
  0x30   : > { %767 = vmatmul.mubr.msk.bf16.vlgmr.msra.gmra.mrb[4].mxu1 %vm392_vm1, %v445_v20 }
  0xfb   : > { %v430_v25 = vpop.f32.mrb[0].mxu1 }
  0xfc   : > { %v730_v26 = vmul.f32 -1.442695, %v430_v25  ;;  %v760_v27 = vpop.f32.mrb[1].mxu1 }
  0xfd   : > { %v433_v28 = vpop.f32.mrb[2].mxu1 }
  0xfe   : > { %847 = vpow2.f32 %v730_v26  ;;  %v761_v29 = vpop.f32.mrb[3].mxu1 }
 0x103   : > { %v500_v30 = vpop.f32.mrb[4].mxu1 }
 0x104   : > { %v506_v31 = vmax.f32 %v500_v30, 0.0  ;;  %v768_v32 = vpop.f32.mrb[5].mxu1 }
 0x105   : > { %v503_v33 = vpop.f32.mrb[6].mxu1 }
 0x106   : > { %v507_v34 = vmul.f32 %v506_v31, %v506_v31  ;;  %v769_v35 = vpop.f32.mrb[7].mxu1 }
 0x108   : > { %v848_v36 = vpop.eup %847  ;;  %v509_v37 = vpack.c.bf16 %v507_v34, %v507_v34 }
 0x109   : > { %v439_v38 = vadd.f32 1.0, %v848_v36 }
 0x10a   : > { %779 = vmatmul.mubr.msk.bf16.vlgmr.msra.gmra.mrb[0].mxu0 %vm542_vm4, %v509_v37 }
 0x10b   : > { %849 = vrcp.f32 %v439_v38 }
 0x115   : > { %v850_v39 = vpop.eup %849 }
 0x116   : > { %v442_v40 = vpack.c.bf16 %v850_v39, %v850_v39 }
 0x118   : > { %443 = vst.msk [vmem:[#allocation3] sm:$0xf] %vm365_vm3, %v442_v40 }
 0x11f   : > { %v591_v47 = vld [vmem:[#allocation3] sm:$0xf] }
 0x120   : > { %v592_v48 = vunpack.c.l.bf16 %v591_v47 }
 0x1dd   : > { %v580_v42 = vpop.f32.mrb[0].mxu0 }
 0x1de   : > { %v586_v43 = vadd.f32 %v580_v42, %v508_v41  ;;  %v780_v44 = vpop.f32.mrb[1].mxu0 }
 0x1df   : > { %v583_v45 = vpop.f32.mrb[2].mxu0 }
 0x1e0   : > { %587 = vst.msk [vmem:[#allocation2] sm:$0xff] %vm392_vm1, %v586_v43  ;;  %v781_v46 = vpop.f32.mrb[3].mxu0 }
 0x1e7   : > { %v593_v49 = vld [vmem:[#allocation2] sm:$0xff] }
 0x1e8   : > { %v594_v50 = vmul.f32 %v593_v49, %v592_v48 }
 0x1ea   : > { %595 = vst.msk [vmem:[%s321_s20] sm:$0xff] %vm392_vm1, %v594_v50 }
 0x1eb   : > { %864 = shalt.err (!%p861_p5)
}
 0x1ec   : > { %s865_s16 = scalar_lea.hbm %s1081_s30, 128  ;;  %s869_s19 = scalar_lea.hbm %s1136_s7, 256 }
 0x1ed   : > { %p866_p6 = scmp.ne.s32.totalorder %s1081_s30, %s865_s16  ;;  %p870_p10 = scmp.lt.u32.totalorder %s1081_s30, %s1136_s7 }
 0x1ee   : > { %p871_p11 = scmp.lt.u32.totalorder %s869_s19, %s865_s16  ;;  %p873_p13 = scmp.lt.u32.totalorder %s865_s16, %s1081_s30 }
 0x1ef   : > { %p867_p7 = pnand %p866_p6, %p1014_p4 }
 0x1f0   : > { %p872_p12 = por %p871_p11, %p870_p10 }
 0x1f1   : > { %p868_p9 = pneg %p867_p7 }
 0x1f2   : > { %p874_p0 = por %p873_p13, %p872_p12 }
 0x1f4   : > { %p875_p1 = pnand %p874_p0, %p868_p9 }
 0x1f6   : > { %878 = shalt.err (!%p875_p1)
}
 0x1f7   : > { %782 = dma.vmem_to_hbm [thread:$0]  (%p1014_p4), %s1083_s21, 128, %s1081_s30, %s597_s8  }
 0x1f8 PF: > { %p788_p2 = scmp.ge.s32.totalorder %s929_s29, 2  ;;  %s622_s23 = sand.u32 1, %s909_s24  }
 0x1f9   : > { %s623_s10 = scalar_lea.sflag [#allocation6], %s622_s23 }
 0x1fa   : > { %p785_p3 = pnand %p788_p2, %p1021_p8 }
 0x1fc   : > { %904 = dma.done.wait (!%p785_p3), %s623_s10, 128  }
 0x1fd   : > { %906 = vsyncadd (!%p785_p3), %s623_s10, 4294967168  ;;  %s20_s29 = sadd.s32 1, %s929_s29   ;;  %s1139_s24 = smov %s913_s25 }
 0x1fe   : > { %p17_p5 = scmp.ge.s32.totalorder %s20_s29, 4   ;;  %s1140_s25 = smov %s917_s26 }
 0x1ff   : > { %s1141_s26 = smov %s1027_s14  ;;  %s1142_s27 = smov %s925_s28 }
 0x200   : > { %s1143_s28 = smov %s1145_s9  ;;  %19 = sbr.rel (!%p17_p5) target bundleno = 4 (0x4), region = 100 }
 0x207   :  { %628 = vsyncpa [#allocation6], 1 }
 0x208   :  { %630 = vsyncpa [#allocation6 + $0x1], 1 }

</bundles_post_ra>
